<compile_context>
chip_gen: v5e
topology: v5e:2x2
jax: 0.10.0
libtpu: 0.0.40
codegen_flags: <defaults>
</compile_context>

<pallas_src>
import jax
import jax.numpy as jnp
from jax.experimental import pallas as pl
from jax.experimental.pallas import tpu as pltpu

_P = 128  # padded lane width for hidden / output features


def _make_actor_mlp_kernel(d_pad):
    """Build the MLP kernel; d_pad is the 16-aligned row offset of w2 in the slab."""

    def _actor_mlp_kernel(x_ref, w_ref, b_ref, out_ref):
        P = out_ref.shape[-1]          # padded feature width (128)
        D = x_ref.shape[-1]            # real input feature dim (unpadded)

        x = x_ref[...]
        if x.dtype != jnp.bfloat16:    # accept bf16 states end-to-end; cast only if needed
            x = x.astype(jnp.bfloat16)

        # static, sublane-aligned slices of the packed bf16 weight slab
        w1 = w_ref[0:D, :]                             # [D, P] (rows D..d_pad are zero, unused)
        w2 = w_ref[d_pad:d_pad + P, :]                 # [P, P]
        w3 = w_ref[d_pad + P:d_pad + 2 * P, :]         # [P, P]

        # layer 1: bf16 matmul on MXU, f32 accumulate, f32 bias + ReLU, bf16 result
        h1 = jnp.dot(x, w1, preferred_element_type=jnp.float32) + b_ref[0:1, :]
        h1 = jnp.maximum(h1, 0.0).astype(jnp.bfloat16)
        # layer 2
        h2 = jnp.dot(h1, w2, preferred_element_type=jnp.float32) + b_ref[1:2, :]
        h2 = jnp.maximum(h2, 0.0).astype(jnp.bfloat16)
        # output layer: lane-dense [TB, 128]; only the first num_actions lanes are
        # real, all padded lanes are exactly zero (zero-padded w3/b3).
        out = jnp.dot(h2, w3, preferred_element_type=jnp.float32) + b_ref[2:3, :]
        out_ref[...] = out.astype(out_ref.dtype)

    return _actor_mlp_kernel


def pack_params(params):
    """Pack w1/b1/w2/b2/w3/b3 into one bf16 weight slab + one f32 bias slab."""
    D, H = params["w1"].shape
    A = params["w3"].shape[1]
    assert H <= _P and A <= _P, "hidden/action dims must fit in 128 lanes"
    Dp = ((D + 15) // 16) * 16   # bf16 sublane alignment for in-kernel slicing

    w1p = jnp.zeros((Dp, _P), jnp.float32).at[:D, :H].set(params["w1"])
    w2p = jnp.zeros((_P, _P), jnp.float32).at[:H, :H].set(params["w2"])
    w3p = jnp.zeros((_P, _P), jnp.float32).at[:H, :A].set(params["w3"])
    packed_w = jnp.concatenate([w1p, w2p, w3p], axis=0).astype(jnp.bfloat16)

    packed_b = jnp.zeros((8, _P), jnp.float32)
    packed_b = packed_b.at[0, :H].set(params["b1"][0])
    packed_b = packed_b.at[1, :H].set(params["b2"][0])
    packed_b = packed_b.at[2, :A].set(params["b3"][0])
    return packed_w, packed_b


def _pick_batch_tile(B):
    """Batch-tile heuristic.

    Small batches: one full-extent block (exempt from the 8-sublane rule, one
    grid step).  Large batches: a 128..1024-row tile with a cdiv grid and a
    ragged last block (rows are independent, so OOB rows in the last block are
    harmless), capped so there are >= 2 grid steps to feed both v7x cores.
    """
    if B <= 512:
        return B
    for tb in (1024, 512, 256, 128):
        if pl.cdiv(B, tb) >= 2:
            return tb
    return 128


def td_lambda_forward(states, packed_w, packed_b, num_actions, *,
                      out_dtype=jnp.bfloat16, return_padded=False,
                      core_parallel=False):
    """Pallas forward pass for TDLambda (== actor MLP).

    states:   [B, state_dims] float32 or bfloat16
    packed_w: [Dp + 2*128, 128] bfloat16  (from pack_params)
    packed_b: [8, 128] float32            (from pack_params)
    returns:  [B, num_actions] (or the zero-padded [B, 128] slab if
              return_padded=True, so a downstream gather can index it directly
              without an extra slice pass).
    """
    B, D = states.shape
    Dp = packed_w.shape[0] - 2 * _P
    assert D <= Dp, "state_dims exceeds the packed parameter slab"

    TB = _pick_batch_tile(B)
    steps = pl.cdiv(B, TB)
    grid = (steps,)

    # States stream: deeper buffering only pays off on multi-step grids.
    if steps >= 3:
        x_spec = pl.BlockSpec((TB, D), lambda i: (i, 0),
                              pipeline_mode=pl.Buffered(3))
    else:
        x_spec = pl.BlockSpec((TB, D), lambda i: (i, 0))

    w_bytes = packed_w.size * packed_w.dtype.itemsize
    b_bytes = packed_b.size * packed_b.dtype.itemsize
    cost = pl.CostEstimate(
        flops=2 * B * (Dp * _P + 2 * _P * _P),
        transcendentals=0,
        bytes_accessed=(B * D * jnp.dtype(states.dtype).itemsize
                        + B * _P * jnp.dtype(out_dtype).itemsize
                        + w_bytes + b_bytes),
    )

    # v7x: 2 TensorCores per chip -> explicit core-level sharding of the batch
    # grid.  v5e/v6e (1 TC): plain "parallel".
    dim_sem = (pltpu.CORE_PARALLEL,) if core_parallel else ("parallel",)

    out_padded = pl.pallas_call(
        _make_actor_mlp_kernel(Dp),
        out_shape=jax.ShapeDtypeStruct((B, _P), out_dtype),
        grid=grid,
        in_specs=[
            x_spec,
            # constant block index -> weights/biases stay VMEM-resident
            pl.BlockSpec(packed_w.shape, lambda i: (0, 0)),
            pl.BlockSpec(packed_b.shape, lambda i: (0, 0)),
        ],
        out_specs=pl.BlockSpec((TB, _P), lambda i: (i, 0)),
        compiler_params=pltpu.CompilerParams(dimension_semantics=dim_sem),
        cost_estimate=cost,
    )(states, packed_w, packed_b)

    if return_padded:
        return out_padded
    return out_padded[:, :num_actions]


def init_params(key, state_dims, hidden, num_actions):
    """Deterministic PyTorch-Linear-style init (uniform +-1/sqrt(fan_in))."""
    ks = jax.random.split(key, 6)

    def lin(kw, kb, fan_in, fan_out):
        bound = 1.0 / jnp.sqrt(jnp.float32(fan_in))
        w = jax.random.uniform(kw, (fan_in, fan_out), jnp.float32, -bound, bound)
        b = jax.random.uniform(kb, (1, fan_out), jnp.float32, -bound, bound)
        return w, b

    w1, b1 = lin(ks[0], ks[1], state_dims, hidden)
    w2, b2 = lin(ks[2], ks[3], hidden, hidden)
    w3, b3 = lin(ks[4], ks[5], hidden, num_actions)
    return {"w1": w1, "b1": b1, "w2": w2, "b2": b2, "w3": w3, "b3": b3}


def reference_forward(states, p):
    """Numerics-matched reference: bf16 matmul inputs, f32 accumulate/bias/ReLU."""
    def mm(a, w):
        return jnp.dot(a.astype(jnp.bfloat16), w.astype(jnp.bfloat16),
                       preferred_element_type=jnp.float32)
    h1 = jnp.maximum(mm(states, p["w1"]) + p["b1"], 0.0)
    h2 = jnp.maximum(mm(h1, p["w2"]) + p["b2"], 0.0)
    return mm(h2, p["w3"]) + p["b3"]


if __name__ == "__main__":
    batch = 8
    state_dims = 32
    hidden = 32
    num_actions = 4

    key = jax.random.PRNGKey(0)
    k_params, k_states = jax.random.split(key)
    params = init_params(k_params, state_dims, hidden, num_actions)
    states = jax.random.normal(k_states, (batch, state_dims), jnp.float32)

    packed_w, packed_b = pack_params(params)   # one-time packing of all 6 tensors
    out = td_lambda_forward(states, packed_w, packed_b, num_actions)
    out = jax.block_until_ready(out)

    ref = reference_forward(states, params)
    assert out.shape == (batch, num_actions)
    assert out.dtype == jnp.bfloat16
    assert jnp.allclose(out.astype(jnp.float32), ref, atol=2e-2, rtol=2e-2), \
        "mismatch vs reference"

    # padded-slab path (what the downstream gather in update() should use)
    out_pad = jax.block_until_ready(
        td_lambda_forward(states, packed_w, packed_b, num_actions,
                          return_padded=True))
    assert out_pad.shape == (batch, _P)
    assert jnp.allclose(out_pad[:, :num_actions].astype(jnp.float32), ref,
                        atol=2e-2, rtol=2e-2)
    assert jnp.all(out_pad[:, num_actions:] == 0)   # padded lanes exactly zero

    print("KERNEL_OK")
</pallas_src>

<mosaic_0001>
module attributes {stable_mosaic.version = 11 : i64} {
  func.func @_actor_mlp_kernel(%arg0: i32, %arg1: memref<8x32xf32, #tpu.memory_space<vmem>>, %arg2: memref<288x128xbf16, #tpu.memory_space<vmem>>, %arg3: memref<8x128xf32, #tpu.memory_space<vmem>>, %arg4: memref<8x128xbf16, #tpu.memory_space<vmem>>) attributes {dimension_semantics = [#tpu.dimension_semantics<parallel>], iteration_bounds = array<i64: 1>, scalar_prefetch = 0 : i64, scratch_operands = 0 : i64, tpu.core_type = #tpu.core_type<tc>, window_params = [{transform_indices = @transform_0, window_bounds = array<i64: 8, 32>}, {pipeline_mode = #tpu.pipeline_mode<synchronous>, transform_indices = @transform_1, window_bounds = array<i64: 288, 128>}, {pipeline_mode = #tpu.pipeline_mode<synchronous>, transform_indices = @transform_2, window_bounds = array<i64: 8, 128>}, {transform_indices = @transform_3, window_bounds = array<i64: 8, 128>}]} {
    %c0 = arith.constant 0 : index
    %c0_0 = arith.constant 0 : index
    %0 = vector.load %arg1[%c0, %c0_0] : memref<8x32xf32, #tpu.memory_space<vmem>>, vector<8x32xf32>
    %1 = arith.truncf %0 : vector<8x32xf32> to vector<8x32xbf16>
    %c0_1 = arith.constant 0 : index
    %c0_2 = arith.constant 0 : index
    %2 = vector.load %arg2[%c0_1, %c0_2] : memref<288x128xbf16, #tpu.memory_space<vmem>>, vector<32x128xbf16>
    %c32 = arith.constant 32 : index
    %c0_3 = arith.constant 0 : index
    %3 = vector.load %arg2[%c32, %c0_3] : memref<288x128xbf16, #tpu.memory_space<vmem>>, vector<128x128xbf16>
    %c160 = arith.constant 160 : index
    %c0_4 = arith.constant 0 : index
    %4 = vector.load %arg2[%c160, %c0_4] : memref<288x128xbf16, #tpu.memory_space<vmem>>, vector<128x128xbf16>
    %cst = arith.constant dense<0.000000e+00> : vector<8x128xf32>
    %5 = tpu.matmul %1, %2, %cst {dimension_numbers = #tpu.dot_dimension_numbers<[1], [0], [0], [1], [0, 0, 1, 1], [], []>} : vector<8x32xbf16>, vector<32x128xbf16>, vector<8x128xf32> -> vector<8x128xf32>
    %c0_5 = arith.constant 0 : index
    %c0_6 = arith.constant 0 : index
    %6 = vector.load %arg3[%c0_5, %c0_6] : memref<8x128xf32, #tpu.memory_space<vmem>>, vector<1x128xf32>
    %7 = vector.broadcast %6 : vector<1x128xf32> to vector<8x128xf32>
    %8 = arith.addf %5, %7 : vector<8x128xf32>
    %cst_7 = arith.constant 0.000000e+00 : f32
    %9 = vector.broadcast %cst_7 : f32 to vector<8x128xf32>
    %10 = arith.maximumf %8, %9 : vector<8x128xf32>
    %11 = arith.truncf %10 : vector<8x128xf32> to vector<8x128xbf16>
    %cst_8 = arith.constant dense<0.000000e+00> : vector<8x128xf32>
    %12 = tpu.matmul %11, %3, %cst_8 {dimension_numbers = #tpu.dot_dimension_numbers<[1], [0], [0], [1], [0, 0, 1, 1], [], []>} : vector<8x128xbf16>, vector<128x128xbf16>, vector<8x128xf32> -> vector<8x128xf32>
    %c1 = arith.constant 1 : index
    %c0_9 = arith.constant 0 : index
    %13 = vector.load %arg3[%c1, %c0_9] : memref<8x128xf32, #tpu.memory_space<vmem>>, vector<1x128xf32>
    %14 = vector.broadcast %13 : vector<1x128xf32> to vector<8x128xf32>
    %15 = arith.addf %12, %14 : vector<8x128xf32>
    %cst_10 = arith.constant 0.000000e+00 : f32
    %16 = vector.broadcast %cst_10 : f32 to vector<8x128xf32>
    %17 = arith.maximumf %15, %16 : vector<8x128xf32>
    %18 = arith.truncf %17 : vector<8x128xf32> to vector<8x128xbf16>
    %cst_11 = arith.constant dense<0.000000e+00> : vector<8x128xf32>
    %19 = tpu.matmul %18, %4, %cst_11 {dimension_numbers = #tpu.dot_dimension_numbers<[1], [0], [0], [1], [0, 0, 1, 1], [], []>} : vector<8x128xbf16>, vector<128x128xbf16>, vector<8x128xf32> -> vector<8x128xf32>
    %c2 = arith.constant 2 : index
    %c0_12 = arith.constant 0 : index
    %20 = vector.load %arg3[%c2, %c0_12] : memref<8x128xf32, #tpu.memory_space<vmem>>, vector<1x128xf32>
    %21 = vector.broadcast %20 : vector<1x128xf32> to vector<8x128xf32>
    %22 = arith.addf %19, %21 : vector<8x128xf32>
    %23 = arith.truncf %22 : vector<8x128xf32> to vector<8x128xbf16>
    %c0_13 = arith.constant 0 : index
    %c0_14 = arith.constant 0 : index
    %24 = vector.load %arg4[%c0_13, %c0_14] : memref<8x128xbf16, #tpu.memory_space<vmem>>, vector<8x128xbf16>
    tpu.vector_store %arg4[%c0_13, %c0_14], %23 {strides = array<i32>} : memref<8x128xbf16, #tpu.memory_space<vmem>>, vector<8x128xbf16>,
    return
  }
  func.func @transform_0(%arg0: i32) -> (i32, i32) {
    %c0_i32 = arith.constant 0 : i32
    %c0_i32_0 = arith.constant 0 : i32
    return %arg0, %c0_i32 : i32, i32
  }
  func.func @transform_1(%arg0: i32) -> (i32, i32) {
    %c0_i32 = arith.constant 0 : i32
    %c0_i32_0 = arith.constant 0 : i32
    %c0_i32_1 = arith.constant 0 : i32
    return %c0_i32, %c0_i32_0 : i32, i32
  }
  func.func @transform_2(%arg0: i32) -> (i32, i32) {
    %c0_i32 = arith.constant 0 : i32
    %c0_i32_0 = arith.constant 0 : i32
    %c0_i32_1 = arith.constant 0 : i32
    return %c0_i32, %c0_i32_0 : i32, i32
  }
  func.func @transform_3(%arg0: i32) -> (i32, i32) {
    %c0_i32 = arith.constant 0 : i32
    %c0_i32_0 = arith.constant 0 : i32
    return %arg0, %c0_i32 : i32, i32
  }
}

</mosaic_0001>

<bundles_post_ra>
// kernel: tpu_custom_call.1
= control target key start
LH: loop header
LB: loop body
LE: loop exit
PB: predicated region body
PF: predicated region fallthrough
CT: control target
= control target key end

     0   :  { %8 = vsyncpa [#allocation3], 0  ;;  %s518_s0 = inlined_call_operand.hbm [shape: f32[8,32], index: 0, kind: input, shape index: {}]   ;;  %s519_s1 = inlined_call_operand.hbm [shape: bf16[288,128], index: 1, kind: input, shape index: {}]   ;;  %s520_s2 = inlined_call_operand.hbm [shape: f32[8,128], index: 2, kind: input, shape index: {}]   ;;  %s521_s3 = inlined_call_operand.hbm [shape: bf16[8,128], index: 3, kind: output, shape index: {}]  }
   0x1   :  { %9 = vsyncpa [#allocation6], 0  ;;  %s26_s14 = sshll.u32 %s519_s1, 4  ;;  %s27_s14 = int_to_ptr.hbm [resolvable:$true] %s26_s14 }
   0x2   :  { %10 = vsyncpa [#allocation4], 0  ;;  %s480_s15 = smov [#allocation5]   ;;  %s16_s19 = sshll.u32 %s518_s0, 4  ;;  %s17_s19 = int_to_ptr.hbm [resolvable:$true] %s16_s19 }
   0x3   :  { %s28_s16 = sshll.u32 %s480_s15, 4  ;;  %s481_s20 = smov 64   ;;  %s29_s16 = int_to_ptr.vmem [resolvable:$true] %s28_s16 }
   0x4   :  { %s482_s21 = smov 4   ;;  %s483_s22 = smov [#allocation2]  }
   0x5   :  { %34 = dma.hbm_to_vmem [thread:$0]  %s27_s14, 2304, %s29_s16, [#allocation6], %s481_s20, %s481_s20, %s482_s21  }
   0x6   :  { %s18_s23 = sshll.u32 %s483_s22, 4  ;;  %s40_s26 = sshll.u32 %s520_s2, 4  ;;  %s19_s23 = int_to_ptr.vmem [resolvable:$true] %s18_s23  ;;  %s41_s26 = int_to_ptr.hbm [resolvable:$true] %s40_s26 }
   0x7   :  { %21 = dma.hbm_to_vmem [thread:$0]  %s17_s19, 128, %s19_s23, [#allocation3]  }
   0x8   :  { %s484_s1 = smov [#allocation7]  }
   0x9   :  { %s42_s27 = sshll.u32 %s484_s1, 4  ;;  %s43_s27 = int_to_ptr.vmem [resolvable:$true] %s42_s27 }
   0xa   :  { %45 = dma.hbm_to_vmem [thread:$0]  %s41_s26, 128, %s43_s27, [#allocation6]  }
   0xb   :  { %474 = dma.done.wait [#allocation3], 128  }
   0xc   :  { %475 = vsyncadd [#allocation3], 4294967168 }
   0xd   :  { %476 = dma.done.wait [#allocation6], 2432  }
   0xe   :  { %477 = vsyncadd [#allocation6], 4294964864  ;;  %v352_v0 = vld [vmem:[#allocation5 + $0x8] sm:$0xff]  ;;  %v351_v2 = vld [vmem:[#allocation5] sm:$0xff]  ;;  %vm111_vm0 = vcmask 261120   ;;  %s485_s0 = smov [#allocation8]  }
   0xf   :  { %v360_v1 = vld [vmem:[#allocation5 + $0x48] sm:$0xff]  ;;  %121 = vmatpush.bf16.msra.mxu0 %v352_v0  ;;  %v59_v3 = vld [vmem:[#allocation2] sm:$0xff]  ;;  %v359_v4 = vld [vmem:[#allocation5 + $0x40] sm:$0xff]  ;;  %s265_s2 = sshll.u32 %s485_s0, 4  ;;  %s267_s30 = sshll.u32 %s521_s3, 4  ;;  %s266_s2 = int_to_ptr.vmem [resolvable:$true] %s265_s2  ;;  %s268_s30 = int_to_ptr.hbm [resolvable:$true] %s267_s30 }
  0x10   :  { %180 = vmatpush.bf16.msra.mxu1 %v360_v1  ;;  %v60_v5 = vpack.c.bf16 %v59_v3, %v59_v3  ;;  %v358_v6 = vld [vmem:[#allocation5 + $0x38] sm:$0xff]  ;;  %v357_v7 = vld [vmem:[#allocation5 + $0x30] sm:$0xff]  ;;  %v356_v8 = vld [vmem:[#allocation5 + $0x28] sm:$0xff] }
  0x11   :  { %v355_v9 = vld [vmem:[#allocation5 + $0x20] sm:$0xff]  ;;  %v354_v10 = vld [vmem:[#allocation5 + $0x18] sm:$0xff]  ;;  %v353_v11 = vld [vmem:[#allocation5 + $0x10] sm:$0xff] }
  0x12   :  { %v368_v12 = vld [vmem:[#allocation5 + $0x88] sm:$0xff]  ;;  %v367_v13 = vld [vmem:[#allocation5 + $0x80] sm:$0xff]  ;;  %v366_v14 = vld [vmem:[#allocation5 + $0x78] sm:$0xff] }
  0x13   :  { %122 = vmatpush.bf16.msra.mxu0 %v351_v2  ;;  %245 = vmatpush.bf16.msra.mxu2 %v368_v12  ;;  %v365_v15 = vld [vmem:[#allocation5 + $0x70] sm:$0xff]  ;;  %v364_v16 = vld [vmem:[#allocation5 + $0x68] sm:$0xff]  ;;  %v363_v17 = vld [vmem:[#allocation5 + $0x60] sm:$0xff] }
  0x14   :  { %181 = vmatpush.bf16.msra.mxu1 %v359_v4  ;;  %v375_v18 = vld [vmem:[#allocation7] ss:$0 sm:$0xff]  ;;  %v362_v24 = vld [vmem:[#allocation5 + $0x58] sm:$0xff]  ;;  %v376_v26 = vld [vmem:[#allocation7 + $0x1] ss:$0 sm:$0xff] }
  0x15   :  { %v361_v25 = vld [vmem:[#allocation5 + $0x50] sm:$0xff] }
  0x16   :  { %286 = vmatmul.msk.bf16.vlgmr.msra.gmra.mxu0 %vm111_vm0, %v60_v5  ;;  %v377_v32 = vld [vmem:[#allocation7 + $0x2] ss:$0 sm:$0xff] }
  0x17   :  { %246 = vmatpush.bf16.msra.mxu2 %v367_v13 }
  0x18   :  { %182 = vmatpush.bf16.msra.mxu1 %v358_v6 }
  0x1b   :  { %247 = vmatpush.bf16.msra.mxu2 %v366_v14 }
  0x1c   :  { %183 = vmatpush.bf16.msra.mxu1 %v357_v7 }
  0x1f   :  { %248 = vmatpush.bf16.msra.mxu2 %v365_v15 }
  0x20   :  { %184 = vmatpush.bf16.msra.mxu1 %v356_v8 }
  0x23   :  { %249 = vmatpush.bf16.msra.mxu2 %v364_v16 }
  0x24   :  { %185 = vmatpush.bf16.msra.mxu1 %v355_v9 }
  0x27   :  { %250 = vmatpush.bf16.msra.mxu2 %v363_v17 }
  0x28   :  { %186 = vmatpush.bf16.msra.mxu1 %v354_v10 }
  0x2b   :  { %251 = vmatpush.bf16.msra.mxu2 %v362_v24 }
  0x2c   :  { %187 = vmatpush.bf16.msra.mxu1 %v353_v11 }
  0x2f   :  { %252 = vmatpush.bf16.msra.mxu2 %v361_v25 }
  0x93   :  { %v124_v19 = vpop.f32.mrf.mxu0 }
  0x94   :  { %v125_v20 = vadd.f32 %v375_v18, %v124_v19 }
  0x96   :  { %v128_v21 = vmax.f32 %v125_v20, 0.0 }
  0x98   :  { %v129_v22 = vpack.c.bf16 %v128_v21, %v128_v21 }
  0x9a   :  { %188 = vmatmul.bf16.vlgmr.msra.gmra.mxu1 %v129_v22 }
  0x9b   :  { %v126_v23 = vpop.f32.mrf.mxu0 }
 0x117   :  { %v189_v27 = vpop.f32.mrf.mxu1 }
 0x118   :  { %v190_v28 = vadd.f32 %v376_v26, %v189_v27 }
 0x11a   :  { %v193_v29 = vmax.f32 %v190_v28, 0.0 }
 0x11c   :  { %v194_v30 = vpack.c.bf16 %v193_v29, %v193_v29 }
 0x11e   :  { %253 = vmatmul.bf16.vlgmr.msra.gmra.mxu2 %v194_v30 }
 0x11f   :  { %v191_v31 = vpop.f32.mrf.mxu1 }
 0x1a1   :  { %v254_v33 = vpop.f32.mrf.mxu2 }
 0x1a2   :  { %v255_v34 = vadd.f32 %v377_v32, %v254_v33 }
 0x1a4   :  { %v258_v35 = vpack.c.bf16 %v255_v34, %v255_v34 }
 0x1a6   :  { %259 = vst [vmem:[#allocation8] sm:$0xf] %v258_v35 }
 0x1a7   :  { %270 = dma.vmem_to_hbm [thread:$0]  %s266_s2, 64, %s268_s30, [#allocation4]  }
 0x1a9   :  { %v256_v36 = vpop.f32.mrf.mxu2 }
 0x1aa   :  { %478 = dma.done.wait [#allocation4], 64  }
 0x1ab   :  { %479 = vsyncadd [#allocation4], 4294967232 }
 0x1ac   :  { %275 = vsyncpa [#allocation3], 1 }
 0x1ad   :  { %276 = vsyncpa [#allocation6], 1 }
 0x1ae   :  { %277 = vsyncpa [#allocation4], 1 }

</bundles_post_ra>
